<compile_context>
chip_gen: v6e
topology: v6e:2x2x1
jax: 0.10.0
libtpu: 0.0.40
codegen_flags: <defaults>
</compile_context>

<pallas_src>
import functools

import jax
import jax.numpy as jnp
from jax import lax
from jax.experimental import pallas as pl
from jax.experimental.pallas import tpu as pltpu

LANES = 128
BLOCK_BYTES_MAX = 4 * 1024 * 1024     # ~4 MiB of bytes per input block per step
ACC_ROWS_MAX = 2048                   # fixed f32 accumulator: (2048, 128) = 1 MiB
NUM_SLICES = 2                        # leading "parallel" axis (dual-TensorCore)
VMEM_LIMIT_BYTES = 32 * 1024 * 1024   # explicit scoped-VMEM limit (all chips OK)


def _round_up(x, m):
    return ((x + m - 1) // m) * m


def _rmse_kernel(x_ref, t_ref, o_ref, acc_ref, *, eps, n_elems,
                 block_rows, acc_rows, blocks_per_slice):
    c = pl.program_id(0)          # reduction slice (parallel axis)
    j = pl.program_id(1)          # block within slice (arbitrary axis)

    @pl.when(j == 0)
    def _():
        acc_ref[...] = jnp.zeros_like(acc_ref)

    # Logical (unclamped) block index.  The tail predicate also covers clamped
    # phantom blocks (their gidx is always >= n_elems), so they get fully
    # masked instead of double-counted.
    blk = c * blocks_per_slice + j
    is_tail = (blk + 1) * (block_rows * LANES) > n_elems

    eps_f = jnp.float32(eps)

    def accumulate(masked):
        # Statically-unrolled sublane-chunk loop: keeps the accumulator (and
        # elementwise temporaries) at <= (acc_rows, 128) regardless of how big
        # the DMA block is.
        lo = 0
        while lo < block_rows:
            rows = min(acc_rows, block_rows - lo)
            x = x_ref[lo:lo + rows, :].astype(jnp.float32)
            t = t_ref[lo:lo + rows, :].astype(jnp.float32)
            diff = x - t
            d = x * x + eps_f
            # EUP approximate reciprocal + one Newton-Raphson refinement:
            # relative error ~ (approx err)^2, far inside the 1e-5 tolerance.
            r = pl.reciprocal(d, approx=True)
            r = r * (jnp.float32(2.0) - d * r)
            val = diff * diff * r
            if masked:
                row = lax.broadcasted_iota(jnp.int32, (rows, LANES), 0)
                col = lax.broadcasted_iota(jnp.int32, (rows, LANES), 1)
                gidx = (blk * block_rows + lo + row) * LANES + col
                # Single select on the result; garbage/pad data is discarded.
                val = jnp.where(gidx < n_elems, val, jnp.float32(0.0))
            acc_ref[0:rows, :] += val
            lo += rows

    @pl.when(jnp.logical_not(is_tail))
    def _():
        accumulate(masked=False)          # hot path: no mask arithmetic

    @pl.when(is_tail)
    def _():
        accumulate(masked=True)           # tail / phantom blocks only

    @pl.when(j == pl.num_programs(1) - 1)
    def _():
        # Fold the accumulator down to one tile-aligned (8, 128) partial sum.
        folded = jnp.sum(acc_ref[...].reshape(acc_rows // 8, 8, LANES), axis=0)
        o_ref[...] = folded


def rmse_loss(inp, tgt, eps=1e-3):
    assert inp.shape == tgt.shape
    n = inp.size

    itemsize = jnp.dtype(inp.dtype).itemsize
    sub = {4: 8, 2: 16, 1: 32}.get(itemsize, 8)   # sublane multiple per dtype

    x = inp.reshape(-1)
    t = tgt.reshape(-1)

    # Pad (with zeros) so the 2-D view is a whole number of (sub, 128) tiles.
    # At most LANES*sub - 1 extra elements; zeros contribute 0 and are also
    # masked in-kernel.
    pad = (-n) % (LANES * sub)
    if pad:
        x = jnp.pad(x, (0, pad))
        t = jnp.pad(t, (0, pad))

    m = (n + pad) // LANES
    x2 = x.reshape(m, LANES)
    t2 = t.reshape(m, LANES)

    # Block sized by bytes (~4 MiB) so bf16 callers get 2x the rows per block.
    rows_cap = max(sub, _round_up(BLOCK_BYTES_MAX // (LANES * itemsize), sub))
    block_rows = min(rows_cap, m)
    acc_rows = min(ACC_ROWS_MAX, block_rows)

    total_blocks = pl.cdiv(m, block_rows)
    num_slices = min(NUM_SLICES, total_blocks)
    blocks_per_slice = pl.cdiv(total_blocks, num_slices)

    def in_map(c, j):
        # Clamp phantom blocks (when total_blocks is odd) to a valid block;
        # their contribution is fully masked out inside the kernel.
        return (jnp.minimum(c * blocks_per_slice + j, total_blocks - 1), 0)

    kernel = functools.partial(
        _rmse_kernel,
        eps=eps,
        n_elems=n,
        block_rows=block_rows,
        acc_rows=acc_rows,
        blocks_per_slice=blocks_per_slice,
    )

    partials = pl.pallas_call(
        kernel,
        out_shape=jax.ShapeDtypeStruct((num_slices * 8, LANES), jnp.float32),
        grid_spec=pltpu.PrefetchScalarGridSpec(
            num_scalar_prefetch=0,
            grid=(num_slices, blocks_per_slice),
            in_specs=[
                pl.BlockSpec((block_rows, LANES), in_map),
                pl.BlockSpec((block_rows, LANES), in_map),
            ],
            out_specs=pl.BlockSpec((8, LANES), lambda c, j: (c, 0)),
            scratch_shapes=[pltpu.VMEM((acc_rows, LANES), jnp.float32)],
        ),
        compiler_params=pltpu.CompilerParams(
            dimension_semantics=("parallel", "arbitrary"),
            vmem_limit_bytes=VMEM_LIMIT_BYTES,
        ),
    )(x2, t2)

    return jnp.sum(partials) / jnp.float32(n)


def rmse_loss_ref(inp, tgt, eps=1e-3):
    inp = inp.astype(jnp.float32)
    tgt = tgt.astype(jnp.float32)
    mse = (inp - tgt) ** 2
    return jnp.mean(mse / (inp ** 2 + eps))


if __name__ == "__main__":
    key = jax.random.PRNGKey(0)
    k1, k2 = jax.random.split(key)

    # Small shapes consistent with a typical NCHW prediction/target pair.
    x = jax.random.normal(k1, (2, 4, 16, 16), dtype=jnp.float32)
    y = jax.random.normal(k2, (2, 4, 16, 16), dtype=jnp.float32)

    out = rmse_loss(x, y)
    out = jax.block_until_ready(out)

    ref = rmse_loss_ref(x, y)
    assert jnp.allclose(out, ref, rtol=1e-5, atol=1e-6), (out, ref)

    print("KERNEL_OK")
</pallas_src>

<mosaic_0001>
module attributes {stable_mosaic.version = 11 : i64} {
  func.func @_rmse_kernel(%arg0: i32, %arg1: i32, %arg2: memref<16x128xf32, #tpu.memory_space<vmem>>, %arg3: memref<16x128xf32, #tpu.memory_space<vmem>>, %arg4: memref<8x128xf32, #tpu.memory_space<vmem>>, %arg5: memref<16x128xf32, #tpu.memory_space<vmem>>) attributes {dimension_semantics = [#tpu.dimension_semantics<parallel>, #tpu.dimension_semantics<arbitrary>], iteration_bounds = array<i64: 1, 1>, scalar_prefetch = 0 : i64, scratch_operands = 1 : i64, tpu.core_type = #tpu.core_type<tc>, window_params = [{transform_indices = @transform_0, window_bounds = array<i64: 16, 128>}, {transform_indices = @transform_1, window_bounds = array<i64: 16, 128>}, {transform_indices = @transform_2, window_bounds = array<i64: 8, 128>}]} {
    %c0_i32 = arith.constant 0 : i32
    %0 = arith.cmpi eq, %arg1, %c0_i32 : i32
    %1 = arith.extui %0 : i1 to i32
    %c0_i32_0 = arith.constant 0 : i32
    %2 = arith.cmpi ne, %1, %c0_i32_0 : i32
    scf.if %2 {
      %cst_8 = arith.constant 0.000000e+00 : f32
      %16 = vector.broadcast %cst_8 : f32 to vector<16x128xf32>
      %c0 = arith.constant 0 : index
      %c0_9 = arith.constant 0 : index
      %17 = vector.load %arg5[%c0, %c0_9] : memref<16x128xf32, #tpu.memory_space<vmem>>, vector<16x128xf32>
      tpu.vector_store %arg5[%c0, %c0_9], %16 {strides = array<i32>} : memref<16x128xf32, #tpu.memory_space<vmem>>, vector<16x128xf32>,
    } else {
    }
    %c1_i32 = arith.constant 1 : i32
    %3 = arith.muli %arg0, %c1_i32 : i32
    %4 = arith.addi %3, %arg1 : i32
    %c1_i32_1 = arith.constant 1 : i32
    %5 = arith.addi %4, %c1_i32_1 : i32
    %c2048_i32 = arith.constant 2048 : i32
    %6 = arith.muli %5, %c2048_i32 : i32
    %c2048_i32_2 = arith.constant 2048 : i32
    %7 = arith.cmpi sgt, %6, %c2048_i32_2 : i32
    %true = arith.constant true
    %8 = arith.xori %7, %true : i1
    %9 = arith.extui %8 : i1 to i32
    %cst = arith.constant 1.000000e-03 : f32
    %c0_i32_3 = arith.constant 0 : i32
    %10 = arith.cmpi ne, %9, %c0_i32_3 : i32
    scf.if %10 {
      %c0 = arith.constant 0 : index
      %c0_8 = arith.constant 0 : index
      %16 = vector.load %arg2[%c0, %c0_8] : memref<16x128xf32, #tpu.memory_space<vmem>>, vector<16x128xf32>
      %c0_9 = arith.constant 0 : index
      %c0_10 = arith.constant 0 : index
      %17 = vector.load %arg3[%c0_9, %c0_10] : memref<16x128xf32, #tpu.memory_space<vmem>>, vector<16x128xf32>
      %18 = arith.subf %16, %17 : vector<16x128xf32>
      %19 = arith.mulf %16, %16 : vector<16x128xf32>
      %20 = vector.broadcast %cst : f32 to vector<16x128xf32>
      %21 = arith.addf %19, %20 : vector<16x128xf32>
      %22 = tpu.reciprocal %21 {approx = true} : vector<16x128xf32> -> vector<16x128xf32>
      %23 = arith.mulf %21, %22 : vector<16x128xf32>
      %cst_11 = arith.constant 2.000000e+00 : f32
      %24 = vector.broadcast %cst_11 : f32 to vector<16x128xf32>
      %25 = arith.subf %24, %23 : vector<16x128xf32>
      %26 = arith.mulf %22, %25 : vector<16x128xf32>
      %27 = arith.mulf %18, %18 : vector<16x128xf32>
      %28 = arith.mulf %27, %26 : vector<16x128xf32>
      %c0_12 = arith.constant 0 : index
      %c0_13 = arith.constant 0 : index
      %29 = vector.load %arg5[%c0_12, %c0_13] : memref<16x128xf32, #tpu.memory_space<vmem>>, vector<16x128xf32>
      %30 = arith.addf %29, %28 : vector<16x128xf32>
      %c0_14 = arith.constant 0 : index
      %c0_15 = arith.constant 0 : index
      %31 = vector.load %arg5[%c0_14, %c0_15] : memref<16x128xf32, #tpu.memory_space<vmem>>, vector<16x128xf32>
      tpu.vector_store %arg5[%c0_14, %c0_15], %30 {strides = array<i32>} : memref<16x128xf32, #tpu.memory_space<vmem>>, vector<16x128xf32>,
    } else {
    }
    %11 = arith.extui %7 : i1 to i32
    %cst_4 = arith.constant 1.000000e-03 : f32
    %c0_i32_5 = arith.constant 0 : i32
    %12 = arith.cmpi ne, %11, %c0_i32_5 : i32
    scf.if %12 {
      %c0 = arith.constant 0 : index
      %c0_8 = arith.constant 0 : index
      %16 = vector.load %arg2[%c0, %c0_8] : memref<16x128xf32, #tpu.memory_space<vmem>>, vector<16x128xf32>
      %c0_9 = arith.constant 0 : index
      %c0_10 = arith.constant 0 : index
      %17 = vector.load %arg3[%c0_9, %c0_10] : memref<16x128xf32, #tpu.memory_space<vmem>>, vector<16x128xf32>
      %18 = arith.subf %16, %17 : vector<16x128xf32>
      %19 = arith.mulf %16, %16 : vector<16x128xf32>
      %20 = vector.broadcast %cst_4 : f32 to vector<16x128xf32>
      %21 = arith.addf %19, %20 : vector<16x128xf32>
      %22 = tpu.reciprocal %21 {approx = true} : vector<16x128xf32> -> vector<16x128xf32>
      %23 = arith.mulf %21, %22 : vector<16x128xf32>
      %cst_11 = arith.constant 2.000000e+00 : f32
      %24 = vector.broadcast %cst_11 : f32 to vector<16x128xf32>
      %25 = arith.subf %24, %23 : vector<16x128xf32>
      %26 = arith.mulf %22, %25 : vector<16x128xf32>
      %27 = arith.mulf %18, %18 : vector<16x128xf32>
      %28 = arith.mulf %27, %26 : vector<16x128xf32>
      %29 = tpu.iota {dimensions = array<i32: 0>} : vector<16x128xi32>
      %30 = tpu.iota {dimensions = array<i32: 1>} : vector<16x128xi32>
      %c16_i32 = arith.constant 16 : i32
      %31 = arith.muli %4, %c16_i32 : i32
      %c0_i32_12 = arith.constant 0 : i32
      %32 = arith.addi %31, %c0_i32_12 : i32
      %33 = vector.broadcast %32 : i32 to vector<16x128xi32>
      %34 = arith.addi %33, %29 : vector<16x128xi32>
      %c128_i32 = arith.constant 128 : i32
      %35 = vector.broadcast %c128_i32 : i32 to vector<16x128xi32>
      %36 = arith.muli %34, %35 : vector<16x128xi32>
      %37 = arith.addi %36, %30 : vector<16x128xi32>
      %c2048_i32_13 = arith.constant 2048 : i32
      %38 = vector.broadcast %c2048_i32_13 : i32 to vector<16x128xi32>
      %39 = arith.cmpi slt, %37, %38 : vector<16x128xi32>
      %cst_14 = arith.constant 0.000000e+00 : f32
      %40 = vector.broadcast %cst_14 : f32 to vector<16x128xf32>
      %41 = arith.select %39, %28, %40 : vector<16x128xi1>, vector<16x128xf32>
      %c0_15 = arith.constant 0 : index
      %c0_16 = arith.constant 0 : index
      %42 = vector.load %arg5[%c0_15, %c0_16] : memref<16x128xf32, #tpu.memory_space<vmem>>, vector<16x128xf32>
      %43 = arith.addf %42, %41 : vector<16x128xf32>
      %c0_17 = arith.constant 0 : index
      %c0_18 = arith.constant 0 : index
      %44 = vector.load %arg5[%c0_17, %c0_18] : memref<16x128xf32, #tpu.memory_space<vmem>>, vector<16x128xf32>
      tpu.vector_store %arg5[%c0_17, %c0_18], %43 {strides = array<i32>} : memref<16x128xf32, #tpu.memory_space<vmem>>, vector<16x128xf32>,
    } else {
    }
    %c0_i32_6 = arith.constant 0 : i32
    %13 = arith.cmpi eq, %arg1, %c0_i32_6 : i32
    %14 = arith.extui %13 : i1 to i32
    %c0_i32_7 = arith.constant 0 : i32
    %15 = arith.cmpi ne, %14, %c0_i32_7 : i32
    scf.if %15 {
      %c0 = arith.constant 0 : index
      %c0_8 = arith.constant 0 : index
      %16 = vector.load %arg5[%c0, %c0_8] : memref<16x128xf32, #tpu.memory_space<vmem>>, vector<16x128xf32>
      %17 = vector.shape_cast %16 : vector<16x128xf32> to vector<2x8x128xf32>
      %cst_9 = arith.constant dense<0.000000e+00> : vector<8x128xf32>
      %18 = vector.multi_reduction <add>, %17, %cst_9 [0] : vector<2x8x128xf32> to vector<8x128xf32>
      %c0_10 = arith.constant 0 : index
      %c0_11 = arith.constant 0 : index
      %19 = vector.load %arg4[%c0_10, %c0_11] : memref<8x128xf32, #tpu.memory_space<vmem>>, vector<8x128xf32>
      tpu.vector_store %arg4[%c0_10, %c0_11], %18 {strides = array<i32>} : memref<8x128xf32, #tpu.memory_space<vmem>>, vector<8x128xf32>,
    } else {
    }
    return
  }
  func.func @transform_0(%arg0: i32, %arg1: i32) -> (i32, i32) {
    %c1_i32 = arith.constant 1 : i32
    %0 = arith.muli %arg0, %c1_i32 : i32
    %1 = arith.addi %0, %arg1 : i32
    %c0_i32 = arith.constant 0 : i32
    %2 = arith.minsi %1, %c0_i32 : i32
    %c0_i32_0 = arith.constant 0 : i32
    %c0_i32_1 = arith.constant 0 : i32
    return %2, %c0_i32_0 : i32, i32
  }
  func.func @transform_1(%arg0: i32, %arg1: i32) -> (i32, i32) {
    %c1_i32 = arith.constant 1 : i32
    %0 = arith.muli %arg0, %c1_i32 : i32
    %1 = arith.addi %0, %arg1 : i32
    %c0_i32 = arith.constant 0 : i32
    %2 = arith.minsi %1, %c0_i32 : i32
    %c0_i32_0 = arith.constant 0 : i32
    %c0_i32_1 = arith.constant 0 : i32
    return %2, %c0_i32_0 : i32, i32
  }
  func.func @transform_2(%arg0: i32, %arg1: i32) -> (i32, i32) {
    %c0_i32 = arith.constant 0 : i32
    %c0_i32_0 = arith.constant 0 : i32
    return %arg0, %c0_i32 : i32, i32
  }
}

</mosaic_0001>

<bundles_post_ra>
// kernel: tpu_custom_call.1
= control target key start
LH: loop header
LB: loop body
LE: loop exit
PB: predicated region body
PF: predicated region fallthrough
CT: control target
= control target key end

     0   :  { %7 = vsyncpa [#allocation4], 0  ;;  %s281_s0 = inlined_call_operand.hbm [shape: f32[16,128], index: 0, kind: input, shape index: {}]   ;;  %s282_s1 = inlined_call_operand.hbm [shape: f32[16,128], index: 1, kind: input, shape index: {}]   ;;  %s283_s2 = inlined_call_operand.hbm [shape: f32[8,128], index: 2, kind: output, shape index: {}]  }
   0x1   :  { %8 = vsyncpa [#allocation7], 0 }
   0x2   :  { %9 = vsyncpa [#allocation5], 0  ;;  %s252_s9 = smov [#allocation3]  }
   0x3   :  { %s21_s10 = sshll.u32 %s252_s9, 4  ;;  %s22_s10 = int_to_ptr.vmem [resolvable:$true] %s21_s10 }
   0x4   :  { %s194_s11 = scalar_lea.vmem %s22_s10, 256  ;;  %p199_p1 = scmp.lt.s32.totalorder %s22_s10, %s22_s10 }
   0x5   :  { %p195_p0 = scmp.ne.s32.totalorder %s22_s10, %s194_s11  ;;  %p200_p2 = scmp.lt.s32.totalorder %s194_s11, %s194_s11 }
   0x7   :  { %p201_p3 = por %p200_p2, %p199_p1 }
   0x9   :  { %p202_p4 = pnand %p201_p3, %p195_p0 }
   0xb   :  { %205 = shalt.err (!%p202_p4)
}
   0xc   :  { %s253_s12 = smov 128   ;;  %s254_s13 = smov 8  }
   0xd   :  { %27 = dma.hbm_to_vmem [thread:$0]  %s281_s0, 256, %s22_s10, [#allocation4], %s253_s12, %s253_s12, %s254_s13  }
   0xe   :  { %s255_s16 = smov [#allocation6]  }
   0xf   :  { %s39_s17 = sshll.u32 %s255_s16, 4  ;;  %s40_s17 = int_to_ptr.vmem [resolvable:$true] %s39_s17 }
  0x10   :  { %s214_s18 = scalar_lea.vmem %s40_s17, 256  ;;  %p219_p6 = scmp.lt.s32.totalorder %s40_s17, %s40_s17 }
  0x11   :  { %p215_p5 = scmp.ne.s32.totalorder %s40_s17, %s214_s18  ;;  %p220_p7 = scmp.lt.s32.totalorder %s214_s18, %s214_s18 }
  0x13   :  { %p221_p8 = por %p220_p7, %p219_p6 }
  0x15   :  { %p222_p9 = pnand %p221_p8, %p215_p5 }
  0x17   :  { %225 = shalt.err (!%p222_p9)
}
  0x18   :  { %45 = dma.hbm_to_vmem [thread:$0]  %s282_s1, 256, %s40_s17, [#allocation7], %s253_s12, %s253_s12, %s254_s13  }
  0x19   :  { %246 = dma.done.wait [#allocation4], 256  }
  0x1a   :  { %247 = vsyncadd [#allocation4], 4294967040 }
  0x1b   :  { %248 = dma.done.wait [#allocation7], 256  }
  0x1c   :  { %249 = vsyncadd [#allocation7], 4294967040  ;;  %v74_v0 = vld [vmem:[#allocation3] sm:$0xff]  ;;  %v75_v1 = vld [vmem:[#allocation3 + $0x8] sm:$0xff]  ;;  %s256_s0 = smov [#allocation8]  }
  0x1d   :  { %v80_v2 = vmul.f32 %v74_v0, %v74_v0  ;;  %v81_v3 = vmul.f32 %v75_v1, %v75_v1  ;;  %v76_v6 = vld [vmem:[#allocation6] sm:$0xff]  ;;  %v77_v7 = vld [vmem:[#allocation6 + $0x8] sm:$0xff]  ;;  %s163_s1 = sshll.u32 %s256_s0, 4  ;;  %s164_s1 = int_to_ptr.vmem [resolvable:$true] %s163_s1 }
  0x1e   :  { %v78_v8 = vsub.f32 %v74_v0, %v76_v6  ;;  %v79_v10 = vsub.f32 %v75_v1, %v77_v7  ;;  %s226_s21 = scalar_lea.vmem %s164_s1, 128  ;;  %p231_p11 = scmp.lt.s32.totalorder %s164_s1, %s164_s1 }
  0x1f   :  { %v82_v4 = vadd.f32 0.001, %v80_v2  ;;  %v83_v5 = vadd.f32 0.001, %v81_v3  ;;  %p227_p10 = scmp.ne.s32.totalorder %s164_s1, %s226_s21  ;;  %p232_p12 = scmp.lt.s32.totalorder %s226_s21, %s226_s21 }
  0x20   :  { %v92_v15 = vmul.f32 %v78_v8, %v78_v8  ;;  %v93_v17 = vmul.f32 %v79_v10, %v79_v10 }
  0x21   :  { %182 = vrcp.f32 %v82_v4  ;;  %p233_p13 = por %p232_p12, %p231_p11 }
  0x22   :  { %184 = vrcp.f32 %v83_v5 }
  0x23   :  { %p234_p0 = pnand %p233_p13, %p227_p10 }
  0x2e   :  { %v183_v9 = vpop.eup %182 }
  0x2f   :  { %v185_v11 = vpop.eup %184  ;;  %v86_v12 = vmul.f32 %v183_v9, %v82_v4 }
  0x30   :  { %v87_v13 = vmul.f32 %v185_v11, %v83_v5 }
  0x31   :  { %v88_v14 = vsub.f32 2.0, %v86_v12 }
  0x32   :  { %v89_v16 = vsub.f32 2.0, %v87_v13 }
  0x33   :  { %v90_v18 = vmul.f32 %v183_v9, %v88_v14 }
  0x34   :  { %v91_v19 = vmul.f32 %v185_v11, %v89_v16 }
  0x35   :  { %v94_v20 = vmul.f32 %v92_v15, %v90_v18 }
  0x36   :  { %v95_v21 = vmul.f32 %v93_v17, %v91_v19 }
  0x38   :  { %v155_v22 = vadd.f32 %v95_v21, %v94_v20 }
  0x3a   :  { %156 = vst [vmem:[#allocation8] sm:$0xff] %v155_v22 }
  0x3b   :  { %237 = shalt.err (!%p234_p0)
}
  0x3c   :  { %166 = dma.vmem_to_hbm [thread:$0]  %s164_s1, 128, %s283_s2, [#allocation5]  }
  0x3d   :  { %250 = dma.done.wait [#allocation5], 128  }
  0x3e   :  { %251 = vsyncadd [#allocation5], 4294967168 }
  0x3f   :  { %170 = vsyncpa [#allocation4], 1 }
  0x40   :  { %171 = vsyncpa [#allocation7], 1 }
  0x41   :  { %172 = vsyncpa [#allocation5], 1 }

</bundles_post_ra>
